<compile_context>
chip_gen: v7x
topology: tpu7x:2x2x1
jax: 0.10.0
libtpu: 0.0.40
codegen_flags: <defaults>
</compile_context>

<pallas_src>
import functools
import math

import jax
import jax.numpy as jnp
from jax import lax
from jax.experimental import pallas as pl
from jax.experimental.pallas import tpu as pltpu


def _round_up(n, m):
    return ((n + m - 1) // m) * m


def _value_kernel(x_ref, w1_ref, b1_ref, w2_ref, b2_ref, w3t_ref, b3_ref, o_ref):
    # fc1 -> tanh : [TB, S](bf16) @ [S, H1](bf16) -> f32; bias-add + tanh in f32.
    h1 = jnp.dot(x_ref[...], w1_ref[...], preferred_element_type=jnp.float32)
    h1 = jnp.tanh(h1 + b1_ref[...])
    # fc2 -> tanh : [TB, H1](bf16) @ [H1, H2](bf16) -> f32.
    h2 = jnp.dot(h1.astype(jnp.bfloat16), w2_ref[...],
                 preferred_element_type=jnp.float32)
    h2 = jnp.tanh(h2 + b2_ref[...])
    # Value head, computed transposed so the output store is lane-dense:
    #   vt[0, j] = sum_k w3t[0, k] * h2[j, k]        -> shape (1, TB)
    vt = lax.dot_general(
        w3t_ref[...], h2.astype(jnp.bfloat16),
        dimension_numbers=(((1,), (1,)), ((), ())),
        preferred_element_type=jnp.float32)
    o_ref[...] = vt + b3_ref[...]


@functools.partial(jax.jit, static_argnames=("block_batch",))
def value_net_forward(x, w1, b1, w2, b2, w3, b3, *, block_batch=512):
    """x: [B, n_states]
    w1: [n_states, n_hiddens_1],   b1: [1, n_hiddens_1]
    w2: [n_hiddens_1, n_hiddens_2], b2: [1, n_hiddens_2]
    w3: [n_hiddens_2, 1],           b3: [1, 1]
    returns: [B, 1] state values.
    """
    B, S = x.shape
    H1 = w1.shape[1]
    H2 = w2.shape[1]

    # Batch tile: multiple of 16 (bf16 sublane packing).  Whenever the grid has
    # more than one step, TB is a multiple of 128 so the (1, TB) output block
    # stays lane-dense.  For mid-size batches, split into >= 2 tiles so v7x's
    # second TensorCore gets work (no-op on v5e/v6e).
    B_r = _round_up(B, 16)
    tb_cap = _round_up(block_batch, 128)
    if B_r <= tb_cap:
        if B_r >= 256:
            TB = _round_up(pl.cdiv(B_r, 2), 128)
        else:
            TB = B_r
    else:
        TB = tb_cap
    num_tiles = pl.cdiv(B, TB)
    B_p = TB * num_tiles

    # Only the batch dim is padded (zero rows are discarded after the call);
    # matmul inputs are cast to bf16, biases stay f32.
    xb = jnp.pad(x.astype(jnp.bfloat16), ((0, B_p - B), (0, 0)))
    w1b = w1.astype(jnp.bfloat16)
    w2b = w2.astype(jnp.bfloat16)
    w3t = w3.astype(jnp.bfloat16).T            # (1, H2): value-head row vector
    b1f = b1.astype(jnp.float32)
    b2f = b2.astype(jnp.float32)
    b3f = b3.astype(jnp.float32)

    out = pl.pallas_call(
        _value_kernel,
        out_shape=jax.ShapeDtypeStruct((1, B_p), jnp.float32),
        grid=(num_tiles,),
        in_specs=[
            # batch-tiled activation tile (double-buffered by the pipeline)
            pl.BlockSpec((TB, S), lambda i: (i, 0)),
            # weights / biases: full-array blocks, VMEM-resident across steps
            pl.BlockSpec((S, H1), lambda i: (0, 0)),
            pl.BlockSpec((1, H1), lambda i: (0, 0)),
            pl.BlockSpec((H1, H2), lambda i: (0, 0)),
            pl.BlockSpec((1, H2), lambda i: (0, 0)),
            pl.BlockSpec((1, H2), lambda i: (0, 0)),   # w3^T
            pl.BlockSpec((1, 1), lambda i: (0, 0)),    # b3 (scalar)
        ],
        out_specs=pl.BlockSpec((1, TB), lambda i: (0, i)),
        compiler_params=pltpu.CompilerParams(
            dimension_semantics=("parallel",),  # shard batch tiles across TCs on v7x
        ),
    )(xb, w1b, b1f, w2b, b2f, w3t, b3f)

    # (1, B_p) lane-dense result -> (B, 1); padded batch columns are dropped.
    return out[0, :B].reshape(B, 1)


def xavier_uniform(key, fan_in, fan_out, dtype=jnp.float32):
    # Matches torch.nn.init.xavier_uniform_ bounds; stored as [fan_in, fan_out].
    bound = math.sqrt(6.0 / (fan_in + fan_out))
    return jax.random.uniform(key, (fan_in, fan_out), dtype=dtype,
                              minval=-bound, maxval=bound)


if __name__ == "__main__":
    # Small shapes consistent with the module's forward.
    batch = 8
    n_states = 16
    n_hiddens_1 = 32
    n_hiddens_2 = 32

    key = jax.random.PRNGKey(0)
    kx, kw1, kw2, kw3, kb1, kb2, kb3 = jax.random.split(key, 7)

    x = jax.random.normal(kx, (batch, n_states), dtype=jnp.float32)

    # Xavier-uniform weights (as in the module); biases use PyTorch Linear's
    # default uniform(-1/sqrt(fan_in), 1/sqrt(fan_in)).
    w1 = xavier_uniform(kw1, n_states, n_hiddens_1)       # [S,  H1]
    w2 = xavier_uniform(kw2, n_hiddens_1, n_hiddens_2)    # [H1, H2]
    w3 = xavier_uniform(kw3, n_hiddens_2, 1)              # [H2, 1]
    b1 = jax.random.uniform(kb1, (1, n_hiddens_1), jnp.float32,
                            minval=-1.0 / math.sqrt(n_states),
                            maxval=1.0 / math.sqrt(n_states))
    b2 = jax.random.uniform(kb2, (1, n_hiddens_2), jnp.float32,
                            minval=-1.0 / math.sqrt(n_hiddens_1),
                            maxval=1.0 / math.sqrt(n_hiddens_1))
    b3 = jax.random.uniform(kb3, (1, 1), jnp.float32,
                            minval=-1.0 / math.sqrt(n_hiddens_2),
                            maxval=1.0 / math.sqrt(n_hiddens_2))

    out = value_net_forward(x, w1, b1, w2, b2, w3, b3)
    out = jax.block_until_ready(out)

    # Pure-JAX reference with the same bf16-rounded matmul inputs and f32
    # accumulation / biases / tanh, matching the kernel's numerics.
    rt = lambda a: a.astype(jnp.bfloat16).astype(jnp.float32)
    ref = jnp.tanh(rt(x) @ rt(w1) + b1)
    ref = jnp.tanh(rt(ref) @ rt(w2) + b2)
    ref = rt(ref) @ rt(w3) + b3

    assert out.shape == (batch, 1)
    assert jnp.allclose(out, ref, atol=5e-3, rtol=5e-3), "mismatch vs reference"

    print("KERNEL_OK")
</pallas_src>

<mosaic_0001>
module attributes {stable_mosaic.version = 11 : i64} {
  func.func @_value_kernel(%arg0: i32, %arg1: memref<16x16xbf16, #tpu.memory_space<vmem>>, %arg2: memref<16x32xbf16, #tpu.memory_space<vmem>>, %arg3: memref<1x32xf32, #tpu.memory_space<vmem>>, %arg4: memref<32x32xbf16, #tpu.memory_space<vmem>>, %arg5: memref<1x32xf32, #tpu.memory_space<vmem>>, %arg6: memref<1x32xbf16, #tpu.memory_space<vmem>>, %arg7: memref<1x1xf32, #tpu.memory_space<vmem>>, %arg8: memref<1x16xf32, #tpu.memory_space<vmem>>) attributes {dimension_semantics = [#tpu.dimension_semantics<parallel>], iteration_bounds = array<i64: 1>, scalar_prefetch = 0 : i64, scratch_operands = 0 : i64, tpu.core_type = #tpu.core_type<tc>, window_params = [{transform_indices = @transform_0, window_bounds = array<i64: 16, 16>}, {pipeline_mode = #tpu.pipeline_mode<synchronous>, transform_indices = @transform_1, window_bounds = array<i64: 16, 32>}, {pipeline_mode = #tpu.pipeline_mode<synchronous>, transform_indices = @transform_2, window_bounds = array<i64: 1, 32>}, {pipeline_mode = #tpu.pipeline_mode<synchronous>, transform_indices = @transform_3, window_bounds = array<i64: 32, 32>}, {pipeline_mode = #tpu.pipeline_mode<synchronous>, transform_indices = @transform_4, window_bounds = array<i64: 1, 32>}, {pipeline_mode = #tpu.pipeline_mode<synchronous>, transform_indices = @transform_5, window_bounds = array<i64: 1, 32>}, {pipeline_mode = #tpu.pipeline_mode<synchronous>, transform_indices = @transform_6, window_bounds = array<i64: 1, 1>}, {transform_indices = @transform_7, window_bounds = array<i64: 1, 16>}]} {
    %c0 = arith.constant 0 : index
    %c0_0 = arith.constant 0 : index
    %0 = vector.load %arg1[%c0, %c0_0] : memref<16x16xbf16, #tpu.memory_space<vmem>>, vector<16x16xbf16>
    %c0_1 = arith.constant 0 : index
    %c0_2 = arith.constant 0 : index
    %1 = vector.load %arg2[%c0_1, %c0_2] : memref<16x32xbf16, #tpu.memory_space<vmem>>, vector<16x32xbf16>
    %cst = arith.constant dense<0.000000e+00> : vector<16x32xf32>
    %2 = tpu.matmul %0, %1, %cst {dimension_numbers = #tpu.dot_dimension_numbers<[1], [0], [0], [1], [0, 0, 1, 1], [], []>} : vector<16x16xbf16>, vector<16x32xbf16>, vector<16x32xf32> -> vector<16x32xf32>
    %c0_3 = arith.constant 0 : index
    %c0_4 = arith.constant 0 : index
    %3 = vector.load %arg3[%c0_3, %c0_4] : memref<1x32xf32, #tpu.memory_space<vmem>>, vector<1x32xf32>
    %4 = vector.broadcast %3 : vector<1x32xf32> to vector<16x32xf32>
    %5 = arith.addf %2, %4 : vector<16x32xf32>
    %6 = math.tanh %5 : vector<16x32xf32>
    %7 = arith.truncf %6 : vector<16x32xf32> to vector<16x32xbf16>
    %c0_5 = arith.constant 0 : index
    %c0_6 = arith.constant 0 : index
    %8 = vector.load %arg4[%c0_5, %c0_6] : memref<32x32xbf16, #tpu.memory_space<vmem>>, vector<32x32xbf16>
    %cst_7 = arith.constant dense<0.000000e+00> : vector<16x32xf32>
    %9 = tpu.matmul %7, %8, %cst_7 {dimension_numbers = #tpu.dot_dimension_numbers<[1], [0], [0], [1], [0, 0, 1, 1], [], []>} : vector<16x32xbf16>, vector<32x32xbf16>, vector<16x32xf32> -> vector<16x32xf32>
    %c0_8 = arith.constant 0 : index
    %c0_9 = arith.constant 0 : index
    %10 = vector.load %arg5[%c0_8, %c0_9] : memref<1x32xf32, #tpu.memory_space<vmem>>, vector<1x32xf32>
    %11 = vector.broadcast %10 : vector<1x32xf32> to vector<16x32xf32>
    %12 = arith.addf %9, %11 : vector<16x32xf32>
    %13 = math.tanh %12 : vector<16x32xf32>
    %c0_10 = arith.constant 0 : index
    %c0_11 = arith.constant 0 : index
    %14 = vector.load %arg6[%c0_10, %c0_11] : memref<1x32xbf16, #tpu.memory_space<vmem>>, vector<1x32xbf16>
    %15 = arith.truncf %13 : vector<16x32xf32> to vector<16x32xbf16>
    %cst_12 = arith.constant dense<0.000000e+00> : vector<1x16xf32>
    %16 = tpu.matmul %14, %15, %cst_12 {dimension_numbers = #tpu.dot_dimension_numbers<[1], [1], [0], [0], [0, 0, 1, 0], [], []>} : vector<1x32xbf16>, vector<16x32xbf16>, vector<1x16xf32> -> vector<1x16xf32>
    %c0_13 = arith.constant 0 : index
    %c0_14 = arith.constant 0 : index
    %17 = vector.load %arg7[%c0_13, %c0_14] : memref<1x1xf32, #tpu.memory_space<vmem>>, vector<1x1xf32>
    %18 = vector.broadcast %17 : vector<1x1xf32> to vector<1x16xf32>
    %19 = arith.addf %16, %18 : vector<1x16xf32>
    %c0_15 = arith.constant 0 : index
    %c0_16 = arith.constant 0 : index
    %20 = vector.load %arg8[%c0_15, %c0_16] : memref<1x16xf32, #tpu.memory_space<vmem>>, vector<1x16xf32>
    tpu.vector_store %arg8[%c0_15, %c0_16], %19 {strides = array<i32>} : memref<1x16xf32, #tpu.memory_space<vmem>>, vector<1x16xf32>,
    return
  }
  func.func @transform_0(%arg0: i32) -> (i32, i32) {
    %c0_i32 = arith.constant 0 : i32
    %c0_i32_0 = arith.constant 0 : i32
    return %arg0, %c0_i32 : i32, i32
  }
  func.func @transform_1(%arg0: i32) -> (i32, i32) {
    %c0_i32 = arith.constant 0 : i32
    %c0_i32_0 = arith.constant 0 : i32
    %c0_i32_1 = arith.constant 0 : i32
    return %c0_i32, %c0_i32_0 : i32, i32
  }
  func.func @transform_2(%arg0: i32) -> (i32, i32) {
    %c0_i32 = arith.constant 0 : i32
    %c0_i32_0 = arith.constant 0 : i32
    %c0_i32_1 = arith.constant 0 : i32
    return %c0_i32, %c0_i32_0 : i32, i32
  }
  func.func @transform_3(%arg0: i32) -> (i32, i32) {
    %c0_i32 = arith.constant 0 : i32
    %c0_i32_0 = arith.constant 0 : i32
    %c0_i32_1 = arith.constant 0 : i32
    return %c0_i32, %c0_i32_0 : i32, i32
  }
  func.func @transform_4(%arg0: i32) -> (i32, i32) {
    %c0_i32 = arith.constant 0 : i32
    %c0_i32_0 = arith.constant 0 : i32
    %c0_i32_1 = arith.constant 0 : i32
    return %c0_i32, %c0_i32_0 : i32, i32
  }
  func.func @transform_5(%arg0: i32) -> (i32, i32) {
    %c0_i32 = arith.constant 0 : i32
    %c0_i32_0 = arith.constant 0 : i32
    %c0_i32_1 = arith.constant 0 : i32
    return %c0_i32, %c0_i32_0 : i32, i32
  }
  func.func @transform_6(%arg0: i32) -> (i32, i32) {
    %c0_i32 = arith.constant 0 : i32
    %c0_i32_0 = arith.constant 0 : i32
    %c0_i32_1 = arith.constant 0 : i32
    return %c0_i32, %c0_i32_0 : i32, i32
  }
  func.func @transform_7(%arg0: i32) -> (i32, i32) {
    %c0_i32 = arith.constant 0 : i32
    %c0_i32_0 = arith.constant 0 : i32
    return %c0_i32, %arg0 : i32, i32
  }
}

</mosaic_0001>

<bundles_post_ra>
// kernel: value_net_forward.1
= control target key start
LH: loop header
LB: loop body
LE: loop exit
PB: predicated region body
PF: predicated region fallthrough
CT: control target
= control target key end

     0   :  { %v285_v0 = vmov 0.0   ;;  %vm286_vm0 = vmmov 0   ;;  %vm51_vm1 = vcmask 130048   ;;  %vm122_vm2 = vcmask 261120   ;;  %s358_s1 = inlined_call_operand.vmem [shape: bf16[16,32], index: 1, kind: input, shape index: {}]   ;;  %s359_s0 = inlined_call_operand.vmem [shape: bf16[16,16], index: 0, kind: input, shape index: {}]   ;;  %s360_s3 = inlined_call_operand.vmem [shape: bf16[32,32], index: 3, kind: input, shape index: {}]   ;;  %s361_s2 = inlined_call_operand.vmem [shape: f32[1,32], index: 2, kind: input, shape index: {}]   ;;  %s362_s6 = inlined_call_operand.<no memory space> [shape: f32[1,1], index: 6, kind: input, shape index: {}]   ;;  %s363_s4 = inlined_call_operand.vmem [shape: f32[1,32], index: 4, kind: input, shape index: {}]   ;;  %s364_s5 = inlined_call_operand.vmem [shape: bf16[1,32], index: 5, kind: input, shape index: {}]   ;;  %s365_s7 = inlined_call_operand.vmem [shape: f32[1,16], index: 7, kind: output, shape index: {}]  }
   0x1   :  { %249 = vmatprep.subr.bf16.mxu0 %v285_v0  ;;  %v273_v1 = vld [vmem:[%s358_s1] sm:$0xff]   ;;  %251 = vmatprep.mubr.msk.bf16.mxu0 %vm286_vm0, %v285_v0  ;;  %v276_v4 = vld [vmem:[%s360_s3 + $0x8] sm:$0xff]   ;;  %v287_v15 = vmov 0   ;;  %v12_v16 = vstv %s362_s6  ;;  %v177_v30 = vlaneseq  ;;  %vm227_vm3 = vcmask 122880  }
   0x2   :  { %v274_v2 = vld [vmem:[%s359_s0] sm:$0xff]   ;;  %255 = vmatprep.subr.bf16.mxu1 %v285_v0  ;;  %259 = vmatprep.mubr.msk.bf16.mxu1 %vm286_vm0, %v285_v0  ;;  %13 = vst [vmem:[#allocation2] sm:$0x1] %v12_v16 }
   0x3   :  { %250 = vmatpush3.bf16.msra.mxu0 %v273_v1  ;;  %v275_v3 = vld [vmem:[%s360_s3] sm:$0xff]   ;;  %272 = vset.pattern.permute.xlu0 %v287_v15  ;;  %v178_v31 = vshrl.u32 %v177_v30, 7 }
   0x4   :  { %263 = vmatprep.subr.bf16.mxu0 %v285_v0  ;;  %256 = vmatpush3.bf16.msra.mxu1 %v275_v3  ;;  %v233_v5 = vld [vmem:[%s361_s2] ss:$0 sm:$0xff] }
   0x5   :  { %257 = vmatprep.subr.bf16.mxu1 %v285_v0  ;;  %v237_v18 = vld [vmem:[%s363_s4] ss:$0 sm:$0xff]  ;;  %v179_v32 = vsub.s32 0, %v178_v31 }
   0x6   :  { %252 = vmatmul.mubr.msk.bf16.vlgmr.msra.gmra.mrb[0].mxu0 %vm51_vm1, %v274_v2  ;;  %v169_v29 = vld [vmem:[%s364_s5] sm:$0x1] }
   0x7   :  { %265 = vmatprep.mubr.msk.bf16.mxu0 %vm286_vm0, %v285_v0 }
   0x8   :  { %258 = vmatpush3.bf16.msra.mxu1 %v276_v4 }
   0x9   :  { %v171_v17 = vld [vmem:[#allocation2] sm:$0x1] }
   0xa   :  { %174 = vperm.xlu0 %272, %v171_v17  }
  0x89   :  { %v175_v33 = vpop.permute.xlu0 %174 }
  0x8a   :  { %v180_v34 = vrot.slane %v175_v33, %v179_v32 }
  0xd9   :  { %v89_v6 = vpop.f32.mrb[0].mxu0 }
  0xda   :  { %v90_v7 = vadd.f32 %v233_v5, %v89_v6  ;;  %v253_v8 = vpop.f32.mrb[1].mxu0 }
  0xdb   :  { %v92_v9 = vpop.f32.mrb[2].mxu0 }
  0xdc   :  { %v93_v10 = vadd.f32 %v233_v5, %v92_v9  ;;  %v254_v11 = vpop.f32.mrb[3].mxu0  ;;  %277 = vtanh.f32 %v90_v7 }
  0xde   :  { %279 = vtanh.f32 %v93_v10 }
  0xe6   :  { %v278_v12 = vpop.eup %277 }
  0xe8   :  { %v280_v13 = vpop.eup %279 }
  0xe9   :  { %v98_v14 = vpack.c.bf16 %v280_v13, %v278_v12 }
  0xeb   :  { %260 = vmatmul.mubr.msk.bf16.vlgmr.msra.gmra.mrb[0].mxu1 %vm122_vm2, %v98_v14 }
 0x1be   :  { %v160_v19 = vpop.f32.mrb[0].mxu1 }
 0x1bf   :  { %v161_v20 = vadd.f32 %v237_v18, %v160_v19  ;;  %v261_v21 = vpop.f32.mrb[1].mxu1 }
 0x1c0   :  { %v163_v22 = vpop.f32.mrb[2].mxu1 }
 0x1c1   :  { %v164_v23 = vadd.f32 %v237_v18, %v163_v22  ;;  %v262_v24 = vpop.f32.mrb[3].mxu1  ;;  %281 = vtanh.f32 %v161_v20 }
 0x1c3   :  { %283 = vtanh.f32 %v164_v23 }
 0x1cb   :  { %v282_v25 = vpop.eup %281 }
 0x1cd   :  { %v284_v26 = vpop.eup %283 }
 0x1ce   :  { %v170_v27 = vpack.c.bf16 %v284_v26, %v282_v25 }
 0x1d0   :  { %v185_v28 = vsel %vm122_vm2, %v170_v27, 0 }
 0x1d1   :  { %264 = vmatpush3.bf16.xpose.msra.mxu0 %v185_v28 }
 0x1d8   :  { %266 = vmatmul.mubr.msk.bf16.vlgmr.msra.gmra.mrb[4].mxu0 %vm122_vm2, %v169_v29 }
 0x2ab   :  { %v221_v35 = vpop.f32.mrb[4].mxu0 }
 0x2ac   :  { %v222_v36 = vadd.f32 %v221_v35, %v180_v34  ;;  %v267_v37 = vpop.f32.mrb[5].mxu0 }
 0x2ad   :  { %v224_v38 = vpop.f32.mrb[6].mxu0 }
 0x2ae   :  { %228 = vst.msk [vmem:[%s365_s7] sm:$0x1] %vm227_vm3, %v222_v36  ;;  %v268_v39 = vpop.f32.mrb[7].mxu0 }

</bundles_post_ra>
